<compile_context>
chip_gen: v5e
topology: v5e:2x2
jax: 0.10.0
libtpu: 0.0.40
codegen_flags: <defaults>
</compile_context>

<pallas_src>
import jax
import jax.numpy as jnp
from jax.experimental import pallas as pl
from jax.experimental.pallas import tpu as pltpu


def _resblock_kernel(x_ref, ss_ref, sh_ref,
                     band0_ref, band1_ref, wr_ref,
                     g0_ref, be0_ref, g1_ref, be1_ref, br_ref, m_ref,
                     o_ref, pad_ref):
    B, H, Lin = x_ref.shape            # Lin  = W * Cp  (Cp = padded in-channels)
    Lout = o_ref.shape[-1]             # Lout = W * Cout
    BH = B * H
    eps = 1e-5
    slope = 0.01                       # PyTorch LeakyReLU default

    # ---- zero only the two halo rows of the shared padded scratch ----
    zrow = jnp.zeros((B, 1, Lin), jnp.float32)
    pad_ref[:, 0:1, :] = zrow
    pad_ref[:, H + 1:H + 2, :] = zrow

    # ---- time scale/shift (the time-MLP itself runs in the wrapper) ----
    pad_ref[:, 1:H + 1, :] = x_ref[...] * ss_ref[...] + sh_ref[...]

    def banded_conv3x3(band_ref, lanes_in):
        # 3x3 conv == 3 row-tap matmuls; dx taps + W zero-padding are folded
        # into the banded (W*Ci, W*Co) weight matrices.
        acc = jnp.dot(pad_ref[:, 0:H, 0:lanes_in].reshape(BH, lanes_in),
                      band_ref[0], preferred_element_type=jnp.float32)
        for dy in (1, 2):
            acc = acc + jnp.dot(
                pad_ref[:, dy:dy + H, 0:lanes_in].reshape(BH, lanes_in),
                band_ref[dy], preferred_element_type=jnp.float32)
        return acc                                             # (BH, Lout)

    def bn_lrelu(y, g_ref, be_ref):
        # BatchNorm2d training mode (biased variance), single pass over y.
        # Per-channel stats are broadcast back to the W*Cout lane layout via
        # one matmul against the channel-averaging matrix m_ref.
        s1 = jnp.sum(y, axis=0, keepdims=True)                 # (1, Lout)
        s2 = jnp.sum(y * y, axis=0, keepdims=True)
        mean = jnp.dot(s1, m_ref[...], preferred_element_type=jnp.float32)
        ex2 = jnp.dot(s2, m_ref[...], preferred_element_type=jnp.float32)
        var = ex2 - mean * mean
        yn = (y - mean) * jax.lax.rsqrt(var + eps) * g_ref[...] + be_ref[...]
        return jnp.where(yn > 0, yn, slope * yn)               # LeakyReLU

    # ---- conv_0 block (conv bias omitted: exactly cancelled by train BN) ----
    h = bn_lrelu(banded_conv3x3(band0_ref, Lin), g0_ref, be0_ref)

    # ---- conv_1 block: reuse the same padded scratch (halo rows still 0) ----
    pad_ref[:, 1:H + 1, 0:Lout] = h.reshape(B, H, Lout)
    h = bn_lrelu(banded_conv3x3(band1_ref, Lout), g1_ref, be1_ref)

    # ---- residual 1x1 conv on original x (block-diagonal lane-dense matmul) --
    res = jnp.dot(x_ref[...].reshape(BH, Lin), wr_ref[...],
                  preferred_element_type=jnp.float32) + br_ref[...]

    o_ref[...] = res + h                                       # (BH, Lout), 128-lane dense


def resblock_forward(x_nchw, ts, params):
    B, Cin, H, W = x_nchw.shape
    Cout = params["w0"].shape[-1]
    Cp = max(Cin, Cout)                 # pad Cin -> Cp so both convs share one scratch
    Lin, Lout = W * Cp, W * Cout
    f32 = jnp.float32

    # ---- time MLP (SiLU -> Linear) hoisted to plain XLA ----
    t = ts * jax.nn.sigmoid(ts)
    tss = t @ params["wt"] + params["bt"]                       # (B, 2*Cin)
    scale, shift = tss[:, :Cin], tss[:, Cin:]

    def tile_bc(v):                                             # (B,Cin) -> (B,1,W*Cp)
        v = jnp.pad(v, ((0, 0), (0, Cp - Cin)))
        return jnp.tile(v, (1, W))[:, None, :].astype(f32)
    ss, sh = tile_bc(scale), tile_bc(shift)

    # ---- x: NCHW -> channel-padded lane-dense (B, H, W*Cp) ----
    x = jnp.transpose(x_nchw, (0, 2, 3, 1))                     # NHWC
    x = jnp.pad(x, ((0, 0), (0, 0), (0, 0), (0, Cp - Cin)))
    x = x.reshape(B, H, Lin).astype(f32)

    # ---- 3x3 convs as W-banded matrices:
    #      band[dy][wi*Ci+ci, wo*Cout+co] = w[dy, wi-wo+1, ci, co] (0 outside) ----
    shiftmat = (jnp.arange(W)[None, :, None]
                == jnp.arange(W)[None, None, :]
                + jnp.arange(3)[:, None, None] - 1).astype(f32)  # (3, W, W)

    def band_matrix(w_hwio, ci_pad):
        ci, co = w_hwio.shape[2], w_hwio.shape[3]
        wpad = jnp.pad(w_hwio.astype(f32),
                       ((0, 0), (0, 0), (0, ci_pad - ci), (0, 0)))
        band = jnp.einsum("dxic,xab->daibc", wpad, shiftmat)    # (3,W,ci_pad,W,co)
        return band.reshape(3, W * ci_pad, W * co)

    band0 = band_matrix(params["w0"], Cp)                       # (3, W*Cp,  W*Cout)
    band1 = band_matrix(params["w1"], Cout)                     # (3, W*Cout, W*Cout)

    # ---- residual 1x1 conv as a block-diagonal (W*Cp, W*Cout) matrix ----
    wr_pad = jnp.pad(params["wr"].astype(f32), ((0, Cp - Cin), (0, 0)))
    wrblk = jnp.einsum("ic,ab->aibc", wr_pad, jnp.eye(W, dtype=f32))
    wrblk = wrblk.reshape(Lin, Lout)

    # ---- channel-averaging matrix for BN batch statistics ----
    m = jnp.einsum("cd,ab->acbd", jnp.eye(Cout, dtype=f32),
                   jnp.ones((W, W), f32)).reshape(Lout, Lout) / (B * H * W)

    def tile_row(v):                                            # (Cout,) -> (1, W*Cout)
        return jnp.tile(jnp.asarray(v, f32).reshape(1, Cout), (1, W))
    g0, be0 = tile_row(params["g0"]), tile_row(params["be0"])
    g1, be1 = tile_row(params["g1"]), tile_row(params["be1"])
    br = tile_row(params["br"])

    inputs = (x, ss, sh, band0, band1, wrblk, g0, be0, g1, be1, br, m)
    vmem = pl.BlockSpec(memory_space=pltpu.MemorySpace.VMEM)

    # TODO(synk): for large B*H*W this should become a gridded two-pass
    # pipeline (stats pass, then normalize pass) so BatchNorm batch statistics
    # stay exact while tiles are double-buffered across the grid / both v7x TCs.
    out2d = pl.pallas_call(
        _resblock_kernel,
        out_shape=jax.ShapeDtypeStruct((B * H, Lout), f32),     # lane-dense output slab
        in_specs=[vmem] * len(inputs),
        out_specs=vmem,
        scratch_shapes=[pltpu.VMEM((B, H + 2, Lin), f32)],      # single shared padded buffer
    )(*inputs)

    out = out2d.reshape(B, H, W, Cout)
    return jnp.transpose(out, (0, 3, 1, 2))                     # NHWC -> NCHW


def init_params(key, cin, cout, tch):
    ks = jax.random.split(key, 12)
    n = jax.random.normal
    return dict(
        wt=n(ks[0], (tch, 2 * cin), jnp.float32) * 0.2,         # Linear weight (T, 2*Cin)
        bt=n(ks[1], (1, 2 * cin), jnp.float32) * 0.1,
        w0=n(ks[2], (3, 3, cin, cout), jnp.float32) * 0.2,      # conv_0 weight HWIO
        b0=n(ks[3], (1, cout), jnp.float32) * 0.1,              # (cancelled by train BN)
        g0=1.0 + n(ks[4], (1, cout), jnp.float32) * 0.1,        # BN0 gamma
        be0=n(ks[5], (1, cout), jnp.float32) * 0.1,             # BN0 beta
        w1=n(ks[6], (3, 3, cout, cout), jnp.float32) * 0.2,     # conv_1 weight HWIO
        b1=n(ks[7], (1, cout), jnp.float32) * 0.1,              # (cancelled by train BN)
        g1=1.0 + n(ks[8], (1, cout), jnp.float32) * 0.1,
        be1=n(ks[9], (1, cout), jnp.float32) * 0.1,
        wr=n(ks[10], (cin, cout), jnp.float32) * 0.2,           # 1x1 res conv (Cin, Cout)
        br=n(ks[11], (1, cout), jnp.float32) * 0.1,
    )


def resblock_reference(x_nchw, ts, params):
    # Pure-JAX reference with identical semantics (for correctness check).
    x = jnp.transpose(x_nchw, (0, 2, 3, 1))
    cin = x.shape[-1]
    t = ts * jax.nn.sigmoid(ts)
    tss = t @ params["wt"] + params["bt"]
    scale, shift = tss[:, :cin], tss[:, cin:]
    h = x * scale[:, None, None, :] + shift[:, None, None, :]

    def block(h, w, b, g, be):
        y = jax.lax.conv_general_dilated(
            h, w, (1, 1), "SAME",
            dimension_numbers=("NHWC", "HWIO", "NHWC")) + b
        mu = y.mean(axis=(0, 1, 2), keepdims=True)
        var = ((y - mu) ** 2).mean(axis=(0, 1, 2), keepdims=True)
        y = (y - mu) / jnp.sqrt(var + 1e-5) * g + be
        return jnp.where(y > 0, y, 0.01 * y)

    h = block(h, params["w0"], params["b0"], params["g0"], params["be0"])
    h = block(h, params["w1"], params["b1"], params["g1"], params["be1"])
    res = jnp.einsum("bhwi,io->bhwo", x, params["wr"]) + params["br"]
    return jnp.transpose(res + h, (0, 3, 1, 2))


if __name__ == "__main__":
    B, Cin, Cout, T, H, W = 2, 4, 8, 32, 16, 16
    key = jax.random.PRNGKey(0)
    kx, kt, kp = jax.random.split(key, 3)
    x = jax.random.normal(kx, (B, Cin, H, W), jnp.float32)      # PyTorch NCHW input
    ts = jax.random.normal(kt, (B, T), jnp.float32)             # time embedding
    params = init_params(kp, Cin, Cout, T)

    out = jax.block_until_ready(resblock_forward(x, ts, params))
    ref = jax.block_until_ready(resblock_reference(x, ts, params))

    assert out.shape == (B, Cout, H, W), out.shape
    max_err = float(jnp.max(jnp.abs(out - ref)))
    if max_err > 1e-3:
        raise AssertionError(f"kernel/reference mismatch, max abs err = {max_err}")
    print("KERNEL_OK")
</pallas_src>

<mosaic_0001>
module attributes {stable_mosaic.version = 11 : i64} {
  func.func @_resblock_kernel(%arg0: memref<2x16x128xf32, #tpu.memory_space<vmem>>, %arg1: memref<2x1x128xf32, #tpu.memory_space<vmem>>, %arg2: memref<2x1x128xf32, #tpu.memory_space<vmem>>, %arg3: memref<3x128x128xf32, #tpu.memory_space<vmem>>, %arg4: memref<3x128x128xf32, #tpu.memory_space<vmem>>, %arg5: memref<128x128xf32, #tpu.memory_space<vmem>>, %arg6: memref<1x128xf32, #tpu.memory_space<vmem>>, %arg7: memref<1x128xf32, #tpu.memory_space<vmem>>, %arg8: memref<1x128xf32, #tpu.memory_space<vmem>>, %arg9: memref<1x128xf32, #tpu.memory_space<vmem>>, %arg10: memref<1x128xf32, #tpu.memory_space<vmem>>, %arg11: memref<128x128xf32, #tpu.memory_space<vmem>>, %arg12: memref<32x128xf32, #tpu.memory_space<vmem>>, %arg13: memref<2x18x128xf32, #tpu.memory_space<vmem>>) attributes {dimension_semantics = [], scalar_prefetch = 0 : i64, scratch_operands = 1 : i64, tpu.core_type = #tpu.core_type<tc>} {
    %cst = arith.constant 0.000000e+00 : f32
    %0 = vector.broadcast %cst : f32 to vector<2x1x128xf32>
    %c0 = arith.constant 0 : index
    %c0_0 = arith.constant 0 : index
    %c0_1 = arith.constant 0 : index
    %1 = vector.load %arg13[%c0, %c0_0, %c0_1] : memref<2x18x128xf32, #tpu.memory_space<vmem>>, vector<2x1x128xf32>
    tpu.vector_store %arg13[%c0, %c0_0, %c0_1], %0 {strides = array<i32>} : memref<2x18x128xf32, #tpu.memory_space<vmem>>, vector<2x1x128xf32>,
    %c0_2 = arith.constant 0 : index
    %c17 = arith.constant 17 : index
    %c0_3 = arith.constant 0 : index
    %2 = vector.load %arg13[%c0_2, %c17, %c0_3] : memref<2x18x128xf32, #tpu.memory_space<vmem>>, vector<2x1x128xf32>
    tpu.vector_store %arg13[%c0_2, %c17, %c0_3], %0 {strides = array<i32>} : memref<2x18x128xf32, #tpu.memory_space<vmem>>, vector<2x1x128xf32>,
    %c0_4 = arith.constant 0 : index
    %c0_5 = arith.constant 0 : index
    %c0_6 = arith.constant 0 : index
    %3 = vector.load %arg0[%c0_4, %c0_5, %c0_6] : memref<2x16x128xf32, #tpu.memory_space<vmem>>, vector<2x16x128xf32>
    %c0_7 = arith.constant 0 : index
    %c0_8 = arith.constant 0 : index
    %c0_9 = arith.constant 0 : index
    %4 = vector.load %arg1[%c0_7, %c0_8, %c0_9] : memref<2x1x128xf32, #tpu.memory_space<vmem>>, vector<2x1x128xf32>
    %5 = vector.broadcast %4 : vector<2x1x128xf32> to vector<2x16x128xf32>
    %6 = arith.mulf %3, %5 : vector<2x16x128xf32>
    %c0_10 = arith.constant 0 : index
    %c0_11 = arith.constant 0 : index
    %c0_12 = arith.constant 0 : index
    %7 = vector.load %arg2[%c0_10, %c0_11, %c0_12] : memref<2x1x128xf32, #tpu.memory_space<vmem>>, vector<2x1x128xf32>
    %8 = vector.broadcast %7 : vector<2x1x128xf32> to vector<2x16x128xf32>
    %9 = arith.addf %6, %8 : vector<2x16x128xf32>
    %c0_13 = arith.constant 0 : index
    %c1 = arith.constant 1 : index
    %c0_14 = arith.constant 0 : index
    %10 = vector.load %arg13[%c0_13, %c1, %c0_14] : memref<2x18x128xf32, #tpu.memory_space<vmem>>, vector<2x16x128xf32>
    tpu.vector_store %arg13[%c0_13, %c1, %c0_14], %9 {strides = array<i32>} : memref<2x18x128xf32, #tpu.memory_space<vmem>>, vector<2x16x128xf32>,
    %c0_15 = arith.constant 0 : index
    %c0_16 = arith.constant 0 : index
    %c0_17 = arith.constant 0 : index
    %11 = vector.load %arg13[%c0_15, %c0_16, %c0_17] : memref<2x18x128xf32, #tpu.memory_space<vmem>>, vector<2x16x128xf32>
    %12 = vector.shape_cast %11 : vector<2x16x128xf32> to vector<32x128xf32>
    %c0_18 = arith.constant 0 : index
    %c0_19 = arith.constant 0 : index
    %c0_20 = arith.constant 0 : index
    %13 = vector.load %arg3[%c0_18, %c0_19, %c0_20] : memref<3x128x128xf32, #tpu.memory_space<vmem>>, vector<1x128x128xf32>
    %14 = vector.shape_cast %13 : vector<1x128x128xf32> to vector<128x128xf32>
    %cst_21 = arith.constant dense<0.000000e+00> : vector<32x128xf32>
    %15 = tpu.matmul %12, %14, %cst_21 {dimension_numbers = #tpu.dot_dimension_numbers<[1], [0], [0], [1], [0, 0, 1, 1], [], []>} : vector<32x128xf32>, vector<128x128xf32>, vector<32x128xf32> -> vector<32x128xf32>
    %c0_22 = arith.constant 0 : index
    %c1_23 = arith.constant 1 : index
    %c0_24 = arith.constant 0 : index
    %16 = vector.load %arg13[%c0_22, %c1_23, %c0_24] : memref<2x18x128xf32, #tpu.memory_space<vmem>>, vector<2x16x128xf32>
    %17 = vector.shape_cast %16 : vector<2x16x128xf32> to vector<32x128xf32>
    %c1_25 = arith.constant 1 : index
    %c0_26 = arith.constant 0 : index
    %c0_27 = arith.constant 0 : index
    %18 = vector.load %arg3[%c1_25, %c0_26, %c0_27] : memref<3x128x128xf32, #tpu.memory_space<vmem>>, vector<1x128x128xf32>
    %19 = vector.shape_cast %18 : vector<1x128x128xf32> to vector<128x128xf32>
    %cst_28 = arith.constant dense<0.000000e+00> : vector<32x128xf32>
    %20 = tpu.matmul %17, %19, %cst_28 {dimension_numbers = #tpu.dot_dimension_numbers<[1], [0], [0], [1], [0, 0, 1, 1], [], []>} : vector<32x128xf32>, vector<128x128xf32>, vector<32x128xf32> -> vector<32x128xf32>
    %21 = arith.addf %15, %20 : vector<32x128xf32>
    %c0_29 = arith.constant 0 : index
    %c2 = arith.constant 2 : index
    %c0_30 = arith.constant 0 : index
    %22 = vector.load %arg13[%c0_29, %c2, %c0_30] : memref<2x18x128xf32, #tpu.memory_space<vmem>>, vector<2x16x128xf32>
    %23 = vector.shape_cast %22 : vector<2x16x128xf32> to vector<32x128xf32>
    %c2_31 = arith.constant 2 : index
    %c0_32 = arith.constant 0 : index
    %c0_33 = arith.constant 0 : index
    %24 = vector.load %arg3[%c2_31, %c0_32, %c0_33] : memref<3x128x128xf32, #tpu.memory_space<vmem>>, vector<1x128x128xf32>
    %25 = vector.shape_cast %24 : vector<1x128x128xf32> to vector<128x128xf32>
    %cst_34 = arith.constant dense<0.000000e+00> : vector<32x128xf32>
    %26 = tpu.matmul %23, %25, %cst_34 {dimension_numbers = #tpu.dot_dimension_numbers<[1], [0], [0], [1], [0, 0, 1, 1], [], []>} : vector<32x128xf32>, vector<128x128xf32>, vector<32x128xf32> -> vector<32x128xf32>
    %27 = arith.addf %21, %26 : vector<32x128xf32>
    %cst_35 = arith.constant dense<0.000000e+00> : vector<128xf32>
    %28 = vector.multi_reduction <add>, %27, %cst_35 [0] : vector<32x128xf32> to vector<128xf32>
    %29 = vector.shape_cast %28 : vector<128xf32> to vector<1x128xf32>
    %30 = arith.mulf %27, %27 : vector<32x128xf32>
    %cst_36 = arith.constant dense<0.000000e+00> : vector<128xf32>
    %31 = vector.multi_reduction <add>, %30, %cst_36 [0] : vector<32x128xf32> to vector<128xf32>
    %32 = vector.shape_cast %31 : vector<128xf32> to vector<1x128xf32>
    %c0_37 = arith.constant 0 : index
    %c0_38 = arith.constant 0 : index
    %33 = vector.load %arg11[%c0_37, %c0_38] : memref<128x128xf32, #tpu.memory_space<vmem>>, vector<128x128xf32>
    %cst_39 = arith.constant dense<0.000000e+00> : vector<1x128xf32>
    %34 = tpu.matmul %29, %33, %cst_39 {dimension_numbers = #tpu.dot_dimension_numbers<[1], [0], [0], [1], [0, 0, 1, 1], [], []>} : vector<1x128xf32>, vector<128x128xf32>, vector<1x128xf32> -> vector<1x128xf32>
    %c0_40 = arith.constant 0 : index
    %c0_41 = arith.constant 0 : index
    %35 = vector.load %arg11[%c0_40, %c0_41] : memref<128x128xf32, #tpu.memory_space<vmem>>, vector<128x128xf32>
    %cst_42 = arith.constant dense<0.000000e+00> : vector<1x128xf32>
    %36 = tpu.matmul %32, %35, %cst_42 {dimension_numbers = #tpu.dot_dimension_numbers<[1], [0], [0], [1], [0, 0, 1, 1], [], []>} : vector<1x128xf32>, vector<128x128xf32>, vector<1x128xf32> -> vector<1x128xf32>
    %37 = arith.mulf %34, %34 : vector<1x128xf32>
    %38 = arith.subf %36, %37 : vector<1x128xf32>
    %39 = vector.broadcast %34 : vector<1x128xf32> to vector<32x128xf32>
    %40 = arith.subf %27, %39 : vector<32x128xf32>
    %cst_43 = arith.constant 9.99999974E-6 : f32
    %41 = vector.broadcast %cst_43 : f32 to vector<1x128xf32>
    %42 = arith.addf %38, %41 : vector<1x128xf32>
    %43 = math.rsqrt %42 : vector<1x128xf32>
    %44 = vector.broadcast %43 : vector<1x128xf32> to vector<32x128xf32>
    %45 = arith.mulf %40, %44 : vector<32x128xf32>
    %c0_44 = arith.constant 0 : index
    %c0_45 = arith.constant 0 : index
    %46 = vector.load %arg6[%c0_44, %c0_45] : memref<1x128xf32, #tpu.memory_space<vmem>>, vector<1x128xf32>
    %47 = vector.broadcast %46 : vector<1x128xf32> to vector<32x128xf32>
    %48 = arith.mulf %45, %47 : vector<32x128xf32>
    %c0_46 = arith.constant 0 : index
    %c0_47 = arith.constant 0 : index
    %49 = vector.load %arg7[%c0_46, %c0_47] : memref<1x128xf32, #tpu.memory_space<vmem>>, vector<1x128xf32>
    %50 = vector.broadcast %49 : vector<1x128xf32> to vector<32x128xf32>
    %51 = arith.addf %48, %50 : vector<32x128xf32>
    %cst_48 = arith.constant 0.000000e+00 : f32
    %52 = vector.broadcast %cst_48 : f32 to vector<32x128xf32>
    %53 = arith.cmpf ogt, %51, %52 : vector<32x128xf32>
    %cst_49 = arith.constant 0.00999999977 : f32
    %54 = vector.broadcast %cst_49 : f32 to vector<32x128xf32>
    %55 = arith.mulf %54, %51 : vector<32x128xf32>
    %56 = arith.select %53, %51, %55 : vector<32x128xi1>, vector<32x128xf32>
    %57 = vector.shape_cast %56 : vector<32x128xf32> to vector<2x16x128xf32>
    %c0_50 = arith.constant 0 : index
    %c1_51 = arith.constant 1 : index
    %c0_52 = arith.constant 0 : index
    %58 = vector.load %arg13[%c0_50, %c1_51, %c0_52] : memref<2x18x128xf32, #tpu.memory_space<vmem>>, vector<2x16x128xf32>
    tpu.vector_store %arg13[%c0_50, %c1_51, %c0_52], %57 {strides = array<i32>} : memref<2x18x128xf32, #tpu.memory_space<vmem>>, vector<2x16x128xf32>,
    %c0_53 = arith.constant 0 : index
    %c0_54 = arith.constant 0 : index
    %c0_55 = arith.constant 0 : index
    %59 = vector.load %arg13[%c0_53, %c0_54, %c0_55] : memref<2x18x128xf32, #tpu.memory_space<vmem>>, vector<2x16x128xf32>
    %60 = vector.shape_cast %59 : vector<2x16x128xf32> to vector<32x128xf32>
    %c0_56 = arith.constant 0 : index
    %c0_57 = arith.constant 0 : index
    %c0_58 = arith.constant 0 : index
    %61 = vector.load %arg4[%c0_56, %c0_57, %c0_58] : memref<3x128x128xf32, #tpu.memory_space<vmem>>, vector<1x128x128xf32>
    %62 = vector.shape_cast %61 : vector<1x128x128xf32> to vector<128x128xf32>
    %cst_59 = arith.constant dense<0.000000e+00> : vector<32x128xf32>
    %63 = tpu.matmul %60, %62, %cst_59 {dimension_numbers = #tpu.dot_dimension_numbers<[1], [0], [0], [1], [0, 0, 1, 1], [], []>} : vector<32x128xf32>, vector<128x128xf32>, vector<32x128xf32> -> vector<32x128xf32>
    %c0_60 = arith.constant 0 : index
    %c1_61 = arith.constant 1 : index
    %c0_62 = arith.constant 0 : index
    %64 = vector.load %arg13[%c0_60, %c1_61, %c0_62] : memref<2x18x128xf32, #tpu.memory_space<vmem>>, vector<2x16x128xf32>
    %65 = vector.shape_cast %64 : vector<2x16x128xf32> to vector<32x128xf32>
    %c1_63 = arith.constant 1 : index
    %c0_64 = arith.constant 0 : index
    %c0_65 = arith.constant 0 : index
    %66 = vector.load %arg4[%c1_63, %c0_64, %c0_65] : memref<3x128x128xf32, #tpu.memory_space<vmem>>, vector<1x128x128xf32>
    %67 = vector.shape_cast %66 : vector<1x128x128xf32> to vector<128x128xf32>
    %cst_66 = arith.constant dense<0.000000e+00> : vector<32x128xf32>
    %68 = tpu.matmul %65, %67, %cst_66 {dimension_numbers = #tpu.dot_dimension_numbers<[1], [0], [0], [1], [0, 0, 1, 1], [], []>} : vector<32x128xf32>, vector<128x128xf32>, vector<32x128xf32> -> vector<32x128xf32>
    %69 = arith.addf %63, %68 : vector<32x128xf32>
    %c0_67 = arith.constant 0 : index
    %c2_68 = arith.constant 2 : index
    %c0_69 = arith.constant 0 : index
    %70 = vector.load %arg13[%c0_67, %c2_68, %c0_69] : memref<2x18x128xf32, #tpu.memory_space<vmem>>, vector<2x16x128xf32>
    %71 = vector.shape_cast %70 : vector<2x16x128xf32> to vector<32x128xf32>
    %c2_70 = arith.constant 2 : index
    %c0_71 = arith.constant 0 : index
    %c0_72 = arith.constant 0 : index
    %72 = vector.load %arg4[%c2_70, %c0_71, %c0_72] : memref<3x128x128xf32, #tpu.memory_space<vmem>>, vector<1x128x128xf32>
    %73 = vector.shape_cast %72 : vector<1x128x128xf32> to vector<128x128xf32>
    %cst_73 = arith.constant dense<0.000000e+00> : vector<32x128xf32>
    %74 = tpu.matmul %71, %73, %cst_73 {dimension_numbers = #tpu.dot_dimension_numbers<[1], [0], [0], [1], [0, 0, 1, 1], [], []>} : vector<32x128xf32>, vector<128x128xf32>, vector<32x128xf32> -> vector<32x128xf32>
    %75 = arith.addf %69, %74 : vector<32x128xf32>
    %cst_74 = arith.constant dense<0.000000e+00> : vector<128xf32>
    %76 = vector.multi_reduction <add>, %75, %cst_74 [0] : vector<32x128xf32> to vector<128xf32>
    %77 = vector.shape_cast %76 : vector<128xf32> to vector<1x128xf32>
    %78 = arith.mulf %75, %75 : vector<32x128xf32>
    %cst_75 = arith.constant dense<0.000000e+00> : vector<128xf32>
    %79 = vector.multi_reduction <add>, %78, %cst_75 [0] : vector<32x128xf32> to vector<128xf32>
    %80 = vector.shape_cast %79 : vector<128xf32> to vector<1x128xf32>
    %c0_76 = arith.constant 0 : index
    %c0_77 = arith.constant 0 : index
    %81 = vector.load %arg11[%c0_76, %c0_77] : memref<128x128xf32, #tpu.memory_space<vmem>>, vector<128x128xf32>
    %cst_78 = arith.constant dense<0.000000e+00> : vector<1x128xf32>
    %82 = tpu.matmul %77, %81, %cst_78 {dimension_numbers = #tpu.dot_dimension_numbers<[1], [0], [0], [1], [0, 0, 1, 1], [], []>} : vector<1x128xf32>, vector<128x128xf32>, vector<1x128xf32> -> vector<1x128xf32>
    %c0_79 = arith.constant 0 : index
    %c0_80 = arith.constant 0 : index
    %83 = vector.load %arg11[%c0_79, %c0_80] : memref<128x128xf32, #tpu.memory_space<vmem>>, vector<128x128xf32>
    %cst_81 = arith.constant dense<0.000000e+00> : vector<1x128xf32>
    %84 = tpu.matmul %80, %83, %cst_81 {dimension_numbers = #tpu.dot_dimension_numbers<[1], [0], [0], [1], [0, 0, 1, 1], [], []>} : vector<1x128xf32>, vector<128x128xf32>, vector<1x128xf32> -> vector<1x128xf32>
    %85 = arith.mulf %82, %82 : vector<1x128xf32>
    %86 = arith.subf %84, %85 : vector<1x128xf32>
    %87 = vector.broadcast %82 : vector<1x128xf32> to vector<32x128xf32>
    %88 = arith.subf %75, %87 : vector<32x128xf32>
    %cst_82 = arith.constant 9.99999974E-6 : f32
    %89 = vector.broadcast %cst_82 : f32 to vector<1x128xf32>
    %90 = arith.addf %86, %89 : vector<1x128xf32>
    %91 = math.rsqrt %90 : vector<1x128xf32>
    %92 = vector.broadcast %91 : vector<1x128xf32> to vector<32x128xf32>
    %93 = arith.mulf %88, %92 : vector<32x128xf32>
    %c0_83 = arith.constant 0 : index
    %c0_84 = arith.constant 0 : index
    %94 = vector.load %arg8[%c0_83, %c0_84] : memref<1x128xf32, #tpu.memory_space<vmem>>, vector<1x128xf32>
    %95 = vector.broadcast %94 : vector<1x128xf32> to vector<32x128xf32>
    %96 = arith.mulf %93, %95 : vector<32x128xf32>
    %c0_85 = arith.constant 0 : index
    %c0_86 = arith.constant 0 : index
    %97 = vector.load %arg9[%c0_85, %c0_86] : memref<1x128xf32, #tpu.memory_space<vmem>>, vector<1x128xf32>
    %98 = vector.broadcast %97 : vector<1x128xf32> to vector<32x128xf32>
    %99 = arith.addf %96, %98 : vector<32x128xf32>
    %cst_87 = arith.constant 0.000000e+00 : f32
    %100 = vector.broadcast %cst_87 : f32 to vector<32x128xf32>
    %101 = arith.cmpf ogt, %99, %100 : vector<32x128xf32>
    %cst_88 = arith.constant 0.00999999977 : f32
    %102 = vector.broadcast %cst_88 : f32 to vector<32x128xf32>
    %103 = arith.mulf %102, %99 : vector<32x128xf32>
    %104 = arith.select %101, %99, %103 : vector<32x128xi1>, vector<32x128xf32>
    %c0_89 = arith.constant 0 : index
    %c0_90 = arith.constant 0 : index
    %c0_91 = arith.constant 0 : index
    %105 = vector.load %arg0[%c0_89, %c0_90, %c0_91] : memref<2x16x128xf32, #tpu.memory_space<vmem>>, vector<2x16x128xf32>
    %106 = vector.shape_cast %105 : vector<2x16x128xf32> to vector<32x128xf32>
    %c0_92 = arith.constant 0 : index
    %c0_93 = arith.constant 0 : index
    %107 = vector.load %arg5[%c0_92, %c0_93] : memref<128x128xf32, #tpu.memory_space<vmem>>, vector<128x128xf32>
    %cst_94 = arith.constant dense<0.000000e+00> : vector<32x128xf32>
    %108 = tpu.matmul %106, %107, %cst_94 {dimension_numbers = #tpu.dot_dimension_numbers<[1], [0], [0], [1], [0, 0, 1, 1], [], []>} : vector<32x128xf32>, vector<128x128xf32>, vector<32x128xf32> -> vector<32x128xf32>
    %c0_95 = arith.constant 0 : index
    %c0_96 = arith.constant 0 : index
    %109 = vector.load %arg10[%c0_95, %c0_96] : memref<1x128xf32, #tpu.memory_space<vmem>>, vector<1x128xf32>
    %110 = vector.broadcast %109 : vector<1x128xf32> to vector<32x128xf32>
    %111 = arith.addf %108, %110 : vector<32x128xf32>
    %112 = arith.addf %111, %104 : vector<32x128xf32>
    %c0_97 = arith.constant 0 : index
    %c0_98 = arith.constant 0 : index
    %113 = vector.load %arg12[%c0_97, %c0_98] : memref<32x128xf32, #tpu.memory_space<vmem>>, vector<32x128xf32>
    tpu.vector_store %arg12[%c0_97, %c0_98], %112 {strides = array<i32>} : memref<32x128xf32, #tpu.memory_space<vmem>>, vector<32x128xf32>,
    return
  }
}

</mosaic_0001>

<bundles_post_ra>
// kernel: tpu_custom_call.1
= control target key start
LH: loop header
LB: loop body
LE: loop exit
PB: predicated region body
PF: predicated region fallthrough
CT: control target
= control target key end

     0   :  { %17 = vsyncpa [#allocation4], 0  ;;  %s1377_s0 = inlined_call_operand.hbm [shape: f32[2,16,128], index: 0, kind: input, shape index: {}]   ;;  %s1378_s1 = inlined_call_operand.hbm [shape: f32[2,1,128], index: 1, kind: input, shape index: {}]   ;;  %s1379_s2 = inlined_call_operand.hbm [shape: f32[2,1,128], index: 2, kind: input, shape index: {}]   ;;  %s1380_s3 = inlined_call_operand.hbm [shape: f32[3,128,128], index: 3, kind: input, shape index: {}]   ;;  %s1381_s4 = inlined_call_operand.hbm [shape: f32[3,128,128], index: 4, kind: input, shape index: {}]   ;;  %s1382_s5 = inlined_call_operand.hbm [shape: f32[128,128], index: 5, kind: input, shape index: {}]   ;;  %s1383_s6 = inlined_call_operand.vmem [shape: f32[1,128], index: 6, kind: input, shape index: {}]   ;;  %s1384_s7 = inlined_call_operand.vmem [shape: f32[1,128], index: 7, kind: input, shape index: {}]   ;;  %s1385_s8 = inlined_call_operand.vmem [shape: f32[1,128], index: 8, kind: input, shape index: {}]   ;;  %s1386_s9 = inlined_call_operand.vmem [shape: f32[1,128], index: 9, kind: input, shape index: {}]   ;;  %s1387_s10 = inlined_call_operand.vmem [shape: f32[1,128], index: 10, kind: input, shape index: {}]   ;;  %s1388_s11 = inlined_call_operand.hbm [shape: f32[128,128], index: 11, kind: input, shape index: {}]   ;;  %s1389_s12 = inlined_call_operand.hbm [shape: f32[32,128], index: 12, kind: output, shape index: {}]  }
   0x1   :  { %18 = vsyncpa [#allocation7], 0 }
   0x2   :  { %19 = vsyncpa [#allocation10], 0 }
   0x3   :  { %20 = vsyncpa [#allocation13], 0  ;;  %s39_s23 = sshll.u32 %s1378_s1, 4  ;;  %s40_s23 = int_to_ptr.hbm [resolvable:$true] %s39_s23 }
   0x4   :  { %21 = vsyncpa [#allocation5], 0  ;;  %s1082_s24 = smov [#allocation6]   ;;  %s1083_s26 = smov 16  }
   0x5   :  { %s41_s25 = sshll.u32 %s1082_s24, 4  ;;  %s1084_s27 = smov 1   ;;  %s42_s25 = int_to_ptr.vmem [resolvable:$true] %s41_s25 }
   0x6   :  { %47 = dma.hbm_to_vmem [thread:$0]  %s40_s23, 32, %s42_s25, [#allocation7], %s1083_s26, %s1083_s26, %s1084_s27  }
   0x7   :  { %s65_s30 = sshll.u32 %s1380_s3, 4  ;;  %s1085_s13 = smov [#allocation9]   ;;  %s66_s30 = int_to_ptr.hbm [resolvable:$true] %s65_s30 }
   0x8   :  { %s67_s14 = sshll.u32 %s1085_s13, 4  ;;  %s91_s16 = sshll.u32 %s1382_s5, 4  ;;  %s68_s14 = int_to_ptr.vmem [resolvable:$true] %s67_s14  ;;  %s92_s16 = int_to_ptr.hbm [resolvable:$true] %s91_s16 }
   0x9   :  { %s1086_s17 = smov 128   ;;  %s1087_s18 = smov 8  }
   0xa   :  { %73 = dma.hbm_to_vmem [thread:$0]  %s66_s30, 6144, %s68_s14, [#allocation10], %s1086_s17, %s1086_s17, %s1087_s18  }
   0xb   :  { %s26_s21 = sshll.u32 %s1377_s0, 4  ;;  %s1088_s3 = smov [#allocation12]   ;;  %s27_s21 = int_to_ptr.hbm [resolvable:$true] %s26_s21 }
   0xc   :  { %s93_s22 = sshll.u32 %s1088_s3, 4  ;;  %s1089_s5 = smov [#allocation3]   ;;  %s94_s22 = int_to_ptr.vmem [resolvable:$true] %s93_s22 }
   0xd   :  { %99 = dma.hbm_to_vmem [thread:$0]  %s92_s16, 2048, %s94_s22, [#allocation13], %s1086_s17, %s1086_s17, %s1087_s18  }
   0xe   :  { %s28_s23 = sshll.u32 %s1089_s5, 4  ;;  %s52_s28 = sshll.u32 %s1379_s2, 4  ;;  %s29_s23 = int_to_ptr.vmem [resolvable:$true] %s28_s23  ;;  %s53_s28 = int_to_ptr.hbm [resolvable:$true] %s52_s28 }
   0xf   :  { %34 = dma.hbm_to_vmem [thread:$0]  %s27_s21, 512, %s29_s23, [#allocation4], %s1086_s17, %s1086_s17, %s1087_s18  }
  0x10   :  { %s78_s30 = sshll.u32 %s1381_s4, 4  ;;  %s1090_s13 = smov [#allocation8]   ;;  %s79_s30 = int_to_ptr.hbm [resolvable:$true] %s78_s30 }
  0x11   :  { %s54_s14 = sshll.u32 %s1090_s13, 4  ;;  %s1091_s15 = smov [#allocation11]   ;;  %s55_s14 = int_to_ptr.vmem [resolvable:$true] %s54_s14 }
  0x12   :  { %60 = dma.hbm_to_vmem [thread:$0]  %s53_s28, 32, %s55_s14, [#allocation7], %s1083_s26, %s1083_s26, %s1084_s27  }
  0x13   :  { %s80_s2 = sshll.u32 %s1091_s15, 4  ;;  %s114_s19 = sshll.u32 %s1388_s11, 4  ;;  %s81_s2 = int_to_ptr.vmem [resolvable:$true] %s80_s2  ;;  %s115_s19 = int_to_ptr.hbm [resolvable:$true] %s114_s19 }
  0x14   :  { %86 = dma.hbm_to_vmem [thread:$0]  %s79_s30, 6144, %s81_s2, [#allocation10], %s1086_s17, %s1086_s17, %s1087_s18  }
  0x15   :  { %s1092_s4 = smov [#allocation14]  }
  0x16   :  { %s116_s20 = sshll.u32 %s1092_s4, 4  ;;  %s117_s20 = int_to_ptr.vmem [resolvable:$true] %s116_s20 }
  0x17   :  { %122 = dma.hbm_to_vmem [thread:$0]  %s115_s19, 2048, %s117_s20, [#allocation13], %s1086_s17, %s1086_s17, %s1087_s18  }
  0x18   :  { %1072 = dma.done.wait [#allocation4], 512  }
  0x19   :  { %1073 = vsyncadd [#allocation4], 4294966784 }
  0x1a   :  { %1074 = dma.done.wait [#allocation7], 64  }
  0x1b   :  { %1075 = vsyncadd [#allocation7], 4294967232 }
  0x1c   :  { %1076 = dma.done.wait [#allocation10], 12288  }
  0x1d   :  { %1077 = vsyncadd [#allocation10], 4294955008 }
  0x1e   :  { %1078 = dma.done.wait [#allocation13], 4096  }
  0x1f   :  { %1079 = vsyncadd [#allocation13], 4294963200  ;;  %v1093_v0 = vmov 0.0   ;;  %v306_v1 = vld [vmem:[#allocation9 + $0x178] sm:$0xff]  ;;  %v305_v2 = vld [vmem:[#allocation9 + $0x170] sm:$0xff]  ;;  %s822_s25 = sshll.u32 %s1389_s12, 4  ;;  %s823_s25 = int_to_ptr.hbm [resolvable:$true] %s822_s25 }
  0x20   :  { %151 = vst [vmem:[#allocation2] sm:$0x1] %v1093_v0  ;;  %v227_v3 = vld [vmem:[#allocation9 + $0xf8] sm:$0xff]  ;;  %307 = vmatpush.msra.mxu2 %v306_v1  ;;  %v226_v5 = vld [vmem:[#allocation9 + $0xf0] sm:$0xff]  ;;  %v304_v6 = vld [vmem:[#allocation9 + $0x168] sm:$0xff] }
  0x21   :  { %152 = vst [vmem:[#allocation2 + $0x18] sm:$0x1] %v1093_v0  ;;  %228 = vmatpush.msra.mxu0 %v227_v3  ;;  %v206_v4 = vld [vmem:[#allocation9 + $0x78] sm:$0xff]  ;;  %v205_v7 = vld [vmem:[#allocation9 + $0x70] sm:$0xff]  ;;  %v225_v8 = vld [vmem:[#allocation9 + $0xe8] sm:$0xff] }
  0x22   :  { %153 = vst [vmem:[#allocation2 + $0x11] sm:$0x1] %v1093_v0  ;;  %257 = vmatpush.msra.mxu1 %v206_v4  ;;  %308 = vmatpush.msra.mxu2 %v305_v2  ;;  %v204_v9 = vld [vmem:[#allocation9 + $0x68] sm:$0xff]  ;;  %v303_v10 = vld [vmem:[#allocation9 + $0x160] sm:$0xff]  ;;  %v302_v13 = vld [vmem:[#allocation9 + $0x158] sm:$0xff] }
  0x23   :  { %154 = vst [vmem:[#allocation2 + $0x29] sm:$0x1] %v1093_v0  ;;  %229 = vmatpush.msra.mxu0 %v226_v5  ;;  %v224_v11 = vld [vmem:[#allocation9 + $0xe0] sm:$0xff]  ;;  %v223_v14 = vld [vmem:[#allocation9 + $0xd8] sm:$0xff]  ;;  %v301_v16 = vld [vmem:[#allocation9 + $0x150] sm:$0xff] }
  0x24   :  { %258 = vmatpush.msra.mxu1 %v205_v7  ;;  %309 = vmatpush.msra.mxu2 %v304_v6  ;;  %v203_v12 = vld [vmem:[#allocation9 + $0x60] sm:$0xff]  ;;  %v202_v15 = vld [vmem:[#allocation9 + $0x58] sm:$0xff]  ;;  %v222_v17 = vld [vmem:[#allocation9 + $0xd0] sm:$0xff] }
  0x25   :  { %230 = vmatpush.msra.mxu0 %v225_v8  ;;  %v201_v18 = vld [vmem:[#allocation9 + $0x50] sm:$0xff]  ;;  %v300_v19 = vld [vmem:[#allocation9 + $0x148] sm:$0xff]  ;;  %v299_v22 = vld [vmem:[#allocation9 + $0x140] sm:$0xff] }
  0x26   :  { %259 = vmatpush.msra.mxu1 %v204_v9  ;;  %310 = vmatpush.msra.mxu2 %v303_v10  ;;  %v221_v20 = vld [vmem:[#allocation9 + $0xc8] sm:$0xff]  ;;  %v220_v23 = vld [vmem:[#allocation9 + $0xc0] sm:$0xff]  ;;  %v298_v24 = vld [vmem:[#allocation9 + $0x138] sm:$0xff] }
  0x27   :  { %231 = vmatpush.msra.mxu0 %v224_v11  ;;  %v200_v21 = vld [vmem:[#allocation9 + $0x48] sm:$0xff]  ;;  %v199_v25 = vld [vmem:[#allocation9 + $0x40] sm:$0xff]  ;;  %v297_v26 = vld [vmem:[#allocation9 + $0x130] sm:$0xff] }
  0x28   :  { %260 = vmatpush.msra.mxu1 %v203_v12  ;;  %311 = vmatpush.msra.mxu2 %v302_v13  ;;  %v219_v27 = vld [vmem:[#allocation9 + $0xb8] sm:$0xff]  ;;  %v1204_v30 = vld [vmem:[#allocation3 + $0x8] sm:$0xff]  ;;  %v218_v33 = vld [vmem:[#allocation9 + $0xb0] sm:$0xff] }
  0x29   :  { %232 = vmatpush.msra.mxu0 %v223_v14  ;;  %v198_v28 = vld [vmem:[#allocation9 + $0x38] sm:$0xff]  ;;  %v296_v32 = vld [vmem:[#allocation9 + $0x128] sm:$0xff]  ;;  %v197_v35 = vld [vmem:[#allocation9 + $0x30] sm:$0xff] }
  0x2a   :  { %261 = vmatpush.msra.mxu1 %v202_v15  ;;  %312 = vmatpush.msra.mxu2 %v301_v16  ;;  %v1202_v29 = vld [vmem:[#allocation3] sm:$0xff]  ;;  %v217_v36 = vld [vmem:[#allocation9 + $0xa8] sm:$0xff]  ;;  %v1210_v43 = vld [vmem:[#allocation3 + $0x18] sm:$0xff] }
  0x2b   :  { %233 = vmatpush.msra.mxu0 %v222_v17  ;;  %v867_v31 = vld [vmem:[#allocation6] ss:$0 sm:$0xff]  ;;  %v868_v34 = vld [vmem:[#allocation8] ss:$0 sm:$0xff]  ;;  %v196_v37 = vld [vmem:[#allocation9 + $0x28] sm:$0xff] }
  0x2c   :  { %262 = vmatpush.msra.mxu1 %v201_v18  ;;  %313 = vmatpush.msra.mxu2 %v300_v19  ;;  %v167_v38 = vmul.f32 %v867_v31, %v1202_v29  ;;  %v168_v39 = vmul.f32 %v867_v31, %v1204_v30  ;;  %v295_v40 = vld [vmem:[#allocation9 + $0x120] sm:$0xff]  ;;  %v1208_v42 = vld [vmem:[#allocation3 + $0x10] sm:$0xff]  ;;  %v869_v46 = vld [vmem:[#allocation6 + $0x1] ss:$0 sm:$0xff] }
  0x2d   :  { %234 = vmatpush.msra.mxu0 %v221_v20  ;;  %v216_v41 = vld [vmem:[#allocation9 + $0xa0] sm:$0xff]  ;;  %v870_v47 = vld [vmem:[#allocation8 + $0x1] ss:$0 sm:$0xff]  ;;  %v169_v49 = vmul.f32 %v869_v46, %v1208_v42  ;;  %v170_v50 = vmul.f32 %v869_v46, %v1210_v43  ;;  %v293_v56 = vld [vmem:[#allocation9 + $0x110] sm:$0xff] }
  0x2e   :  { %263 = vmatpush.msra.mxu1 %v200_v21  ;;  %314 = vmatpush.msra.mxu2 %v299_v22  ;;  %v179_v44 = vadd.f32 %v868_v34, %v167_v38  ;;  %v180_v45 = vadd.f32 %v868_v34, %v168_v39  ;;  %v195_v48 = vld [vmem:[#allocation9 + $0x20] sm:$0xff]  ;;  %v294_v51 = vld [vmem:[#allocation9 + $0x118] sm:$0xff]  ;;  %v214_v57 = vld [vmem:[#allocation9 + $0x90] sm:$0xff] }
  0x2f   :  { %235 = vmatpush.msra.mxu0 %v220_v23  ;;  %v215_v52 = vld [vmem:[#allocation9 + $0x98] sm:$0xff]  ;;  %v181_v54 = vadd.f32 %v870_v47, %v169_v49  ;;  %v182_v55 = vadd.f32 %v870_v47, %v170_v50  ;;  %v193_v58 = vld [vmem:[#allocation9 + $0x10] sm:$0xff]  ;;  %v292_v59 = vld [vmem:[#allocation9 + $0x108] sm:$0xff] }
  0x30   :  { %264 = vmatpush.msra.mxu1 %v199_v25  ;;  %315 = vmatpush.msra.mxu2 %v298_v24  ;;  %183 = vst [vmem:[#allocation2 + $0x1] sm:$0xff] %v179_v44  ;;  %v194_v53 = vld [vmem:[#allocation9 + $0x18] sm:$0xff]  ;;  %v213_v60 = vld [vmem:[#allocation9 + $0x88] sm:$0xff]  ;;  %v291_v62 = vld [vmem:[#allocation9 + $0x100] sm:$0xff] }
  0x31   :  { %236 = vmatpush.msra.mxu0 %v219_v27  ;;  %184 = vst [vmem:[#allocation2 + $0x9] sm:$0xff] %v180_v45  ;;  %v192_v61 = vld [vmem:[#allocation9 + $0x8] sm:$0xff]  ;;  %v212_v63 = vld [vmem:[#allocation9 + $0x80] sm:$0xff]  ;;  %v1214_v9 = vld [vmem:[#allocation14 + $0x78] sm:$0xff] }
  0x32   :  { %265 = vmatpush.msra.mxu1 %v198_v28  ;;  %316 = vmatpush.msra.mxu2 %v297_v26  ;;  %185 = vst [vmem:[#allocation2 + $0x19] sm:$0xff] %v181_v54  ;;  %v191_v1 = vld [vmem:[#allocation9] sm:$0xff]  ;;  %v1218_v10 = vld [vmem:[#allocation14 + $0x70] sm:$0xff]  ;;  %v1222_v11 = vld [vmem:[#allocation14 + $0x68] sm:$0xff] }
  0x33   :  { %237 = vmatpush.msra.mxu0 %v218_v33  ;;  %186 = vst [vmem:[#allocation2 + $0x21] sm:$0xff] %v182_v55  ;;  %378 = vmatpush.msra.mxu3 %v1214_v9  ;;  %v1226_v12 = vld [vmem:[#allocation14 + $0x60] sm:$0xff]  ;;  %v1230_v13 = vld [vmem:[#allocation14 + $0x58] sm:$0xff]  ;;  %v1234_v14 = vld [vmem:[#allocation14 + $0x50] sm:$0xff] }
  0x34   :  { %266 = vmatpush.msra.mxu1 %v197_v35  ;;  %317 = vmatpush.msra.mxu2 %v296_v32  ;;  %v1238_v15 = vld [vmem:[#allocation14 + $0x48] sm:$0xff]  ;;  %v1242_v16 = vld [vmem:[#allocation14 + $0x40] sm:$0xff]  ;;  %v1246_v17 = vld [vmem:[#allocation14 + $0x38] sm:$0xff] }
  0x35   :  { %238 = vmatpush.msra.mxu0 %v217_v36  ;;  %379 = vmatpush.msra.mxu3 %v1218_v10  ;;  %v1250_v20 = vld [vmem:[#allocation14 + $0x30] sm:$0xff]  ;;  %v1254_v21 = vld [vmem:[#allocation14 + $0x28] sm:$0xff]  ;;  %v1258_v22 = vld [vmem:[#allocation14 + $0x20] sm:$0xff] }
  0x36   :  { %267 = vmatpush.msra.mxu1 %v196_v37  ;;  %318 = vmatpush.msra.mxu2 %v295_v40  ;;  %v1260_v23 = vld [vmem:[#allocation14 + $0x18] sm:$0xff]  ;;  %v1264_v25 = vld [vmem:[#allocation14 + $0x10] sm:$0xff]  ;;  %v1268_v28 = vld [vmem:[#allocation14 + $0x8] sm:$0xff] }
  0x37   :  { %239 = vmatpush.msra.mxu0 %v216_v41  ;;  %v187_v2 = vld [vmem:[#allocation2] sm:$0xff]  ;;  %380 = vmatpush.msra.mxu3 %v1222_v11  ;;  %v1272_v31 = vld [vmem:[#allocation14] sm:$0xff] }
  0x38   :  { %268 = vmatpush.msra.mxu1 %v195_v48  ;;  %319 = vmatpush.msra.mxu2 %v294_v51  ;;  %v286_v0 = vld [vmem:[#allocation2 + $0x2] sm:$0xff]  ;;  %v287_v3 = vld [vmem:[#allocation2 + $0xa] sm:$0xff] }
  0x39   :  { %240 = vmatpush.msra.mxu0 %v215_v52  ;;  %v188_v4 = vld [vmem:[#allocation2 + $0x8] sm:$0xff]  ;;  %v189_v6 = vld [vmem:[#allocation2 + $0x18] sm:$0xff]  ;;  %381 = vmatpush.msra.mxu3 %v1226_v12 }
  0x3a   :  { %269 = vmatpush.msra.mxu1 %v194_v53  ;;  %320 = vmatpush.msra.mxu2 %v293_v56  ;;  %v288_v5 = vld [vmem:[#allocation2 + $0x1a] sm:$0xff]  ;;  %v289_v7 = vld [vmem:[#allocation2 + $0x22] sm:$0xff] }
  0x3b   :  { %241 = vmatpush.msra.mxu0 %v214_v57  ;;  %v190_v8 = vld [vmem:[#allocation2 + $0x20] sm:$0xff]  ;;  %382 = vmatpush.msra.mxu3 %v1230_v13 }
  0x3c   :  { %270 = vmatpush.msra.mxu1 %v193_v58  ;;  %321 = vmatpush.msra.mxu2 %v292_v59 }
  0x3d   :  { %242 = vmatpush.msra.mxu0 %v213_v60  ;;  %383 = vmatpush.msra.mxu3 %v1234_v14 }
  0x3e   :  { %271 = vmatpush.msra.mxu1 %v192_v61  ;;  %322 = vmatpush.msra.mxu2 %v291_v62 }
  0x3f   :  { %243 = vmatpush.msra.mxu0 %v212_v63  ;;  %323 = vmatmul.f32.vlgmr.msra.gmra.mxu2 %v286_v0 }
  0x40   :  { %272 = vmatpush.msra.mxu1 %v191_v1  ;;  %244 = vmatmul.f32.vlgmr.msra.gmra.mxu0 %v179_v44 }
  0x41   :  { %273 = vmatmul.f32.vlgmr.msra.gmra.mxu1 %v187_v2  ;;  %398 = vmatpush.msrb.mxu0 %v1214_v9 }
  0x42   :  { %384 = vmatpush.msra.mxu3 %v1238_v15 }
  0x43   :  { %399 = vmatpush.msrb.mxu0 %v1218_v10 }
  0x44   :  { %385 = vmatpush.msra.mxu3 %v1242_v16 }
  0x45   :  { %400 = vmatpush.msrb.mxu0 %v1222_v11 }
  0x46   :  { %386 = vmatpush.msra.mxu3 %v1246_v17 }
  0x47   :  { %326 = vmatmul.f32.gmra.mxu2 %v287_v3  ;;  %401 = vmatpush.msrb.mxu0 %v1226_v12 }
  0x48   :  { %247 = vmatmul.f32.gmra.mxu0 %v180_v45  ;;  %387 = vmatpush.msra.mxu3 %v1250_v20 }
  0x49   :  { %276 = vmatmul.f32.gmra.mxu1 %v188_v4  ;;  %402 = vmatpush.msrb.mxu0 %v1230_v13 }
  0x4a   :  { %388 = vmatpush.msra.mxu3 %v1254_v21 }
  0x4b   :  { %403 = vmatpush.msrb.mxu0 %v1234_v14 }
  0x4c   :  { %389 = vmatpush.msra.mxu3 %v1258_v22 }
  0x4d   :  { %404 = vmatpush.msrb.mxu0 %v1238_v15 }
  0x4e   :  { %390 = vmatpush.msra.mxu3 %v1260_v23 }
  0x4f   :  { %329 = vmatmul.f32.gmra.mxu2 %v288_v5  ;;  %405 = vmatpush.msrb.mxu0 %v1242_v16 }
  0x50   :  { %250 = vmatmul.f32.gmra.mxu0 %v181_v54  ;;  %391 = vmatpush.msra.mxu3 %v1264_v25 }
  0x51   :  { %279 = vmatmul.f32.gmra.mxu1 %v189_v6  ;;  %406 = vmatpush.msrb.mxu0 %v1246_v17 }
  0x52   :  { %392 = vmatpush.msra.mxu3 %v1268_v28 }
  0x53   :  { %407 = vmatpush.msrb.mxu0 %v1250_v20 }
  0x54   :  { %393 = vmatpush.msra.mxu3 %v1272_v31 }
  0x55   :  { %408 = vmatpush.msrb.mxu0 %v1254_v21 }
  0x57   :  { %332 = vmatmul.f32.gmra.mxu2 %v289_v7  ;;  %409 = vmatpush.msrb.mxu0 %v1258_v22  ;;  %v513_v7 = vld [vmem:[#allocation11 + $0xf8] sm:$0xff] }
  0x58   :  { %253 = vmatmul.f32.gmra.mxu0 %v182_v55  ;;  %514 = vmatpush.msrb.mxu1 %v513_v7  ;;  %v499_v7 = vld [vmem:[#allocation11 + $0x88] sm:$0xff] }
  0x59   :  { %282 = vmatmul.f32.gmra.mxu1 %v190_v8  ;;  %410 = vmatpush.msrb.mxu0 %v1260_v23  ;;  %v512_v8 = vld [vmem:[#allocation11 + $0xf0] sm:$0xff] }
  0x5a   :  { %515 = vmatpush.msrb.mxu1 %v512_v8 }
  0x5b   :  { %411 = vmatpush.msrb.mxu0 %v1264_v25 }
  0x5d   :  { %412 = vmatpush.msrb.mxu0 %v1268_v28 }
  0x5f   :  { %413 = vmatpush.msrb.mxu0 %v1272_v31 }
  0x61   :  { %664 = vmatpush.msra.mxu0 %v1214_v9 }
  0x63   :  { %665 = vmatpush.msra.mxu0 %v1218_v10 }
  0x65   :  { %666 = vmatpush.msra.mxu0 %v1222_v11 }
  0x67   :  { %667 = vmatpush.msra.mxu0 %v1226_v12 }
  0x69   :  { %668 = vmatpush.msra.mxu0 %v1230_v13 }
  0x6b   :  { %669 = vmatpush.msra.mxu0 %v1234_v14 }
  0x6d   :  { %670 = vmatpush.msra.mxu0 %v1238_v15 }
  0x6f   :  { %671 = vmatpush.msra.mxu0 %v1242_v16 }
  0x71   :  { %672 = vmatpush.msra.mxu0 %v1246_v17 }
  0x73   :  { %673 = vmatpush.msra.mxu0 %v1250_v20 }
  0x75   :  { %674 = vmatpush.msra.mxu0 %v1254_v21 }
  0x77   :  { %675 = vmatpush.msra.mxu0 %v1258_v22 }
  0x79   :  { %676 = vmatpush.msra.mxu0 %v1260_v23 }
  0x7b   :  { %677 = vmatpush.msra.mxu0 %v1264_v25 }
  0x7d   :  { %678 = vmatpush.msra.mxu0 %v1268_v28 }
  0x7f   :  { %679 = vmatpush.msra.mxu0 %v1272_v31 }
  0xbd   :  { %v245_v18 = vpop.f32.mrf.mxu0 }
  0xbe   :  { %v274_v19 = vpop.f32.mrf.mxu1 }
  0xbf   :  { %v275_v36 = vadd.f32 %v274_v19, %v245_v18  ;;  %v511_v18 = vld [vmem:[#allocation11 + $0xe8] sm:$0xff]  ;;  %v510_v19 = vld [vmem:[#allocation11 + $0xe0] sm:$0xff] }
  0xc0   :  { %516 = vmatpush.msrb.mxu1 %v511_v18  ;;  %v481_v18 = vld [vmem:[#allocation11 + $0x20] sm:$0xff] }
  0xc2   :  { %v324_v24 = vpop.f32.mrf.mxu2  ;;  %517 = vmatpush.msrb.mxu1 %v510_v19  ;;  %v581_v19 = vld [vmem:[#allocation11 + $0x120] sm:$0xff] }
  0xc3   :  { %v1285_v40 = vadd.f32 %v324_v24, %v275_v36  ;;  %v492_v24 = vld [vmem:[#allocation11 + $0x78] sm:$0xff]  ;;  %v590_v36 = vld [vmem:[#allocation11 + $0x168] sm:$0xff] }
  0xc4   :  { %543 = vmatpush.msrb.mxu2 %v492_v24  ;;  %v498_v24 = vld [vmem:[#allocation11 + $0x80] sm:$0xff] }
  0xc5   :  { %v248_v26 = vpop.f32.mrf.mxu0  ;;  %v349_v48 = vmul.f32 %v1285_v40, %v1285_v40 }
  0xc6   :  { %v277_v27 = vpop.f32.mrf.mxu1 }
  0xc7   :  { %v278_v35 = vadd.f32 %v277_v27, %v248_v26  ;;  %v592_v26 = vld [vmem:[#allocation11 + $0x178] sm:$0xff] }
  0xc8   :  { %v509_v27 = vld [vmem:[#allocation11 + $0xd8] sm:$0xff]  ;;  %593 = vmatpush.msrb.mxu3 %v592_v26 }
  0xc9   :  { %518 = vmatpush.msrb.mxu1 %v509_v27  ;;  %v480_v26 = vld [vmem:[#allocation11 + $0x18] sm:$0xff] }
  0xca   :  { %v327_v32 = vpop.f32.mrf.mxu2  ;;  %v580_v27 = vld [vmem:[#allocation11 + $0x118] sm:$0xff] }
  0xcb   :  { %v1282_v39 = vadd.f32 %v327_v32, %v278_v35  ;;  %v491_v32 = vld [vmem:[#allocation11 + $0x70] sm:$0xff]  ;;  %v490_v35 = vld [vmem:[#allocation11 + $0x68] sm:$0xff] }
  0xcc   :  { %544 = vmatpush.msrb.mxu2 %v491_v32  ;;  %v479_v32 = vld [vmem:[#allocation11 + $0x10] sm:$0xff] }
  0xcd   :  { %v251_v33 = vpop.f32.mrf.mxu0  ;;  %v350_v46 = vmul.f32 %v1282_v39, %v1282_v39  ;;  %v340_v49 = vadd.f32 %v1282_v39, %v1285_v40 }
  0xce   :  { %v280_v34 = vpop.f32.mrf.mxu1  ;;  %545 = vmatpush.msrb.mxu2 %v490_v35  ;;  %v578_v35 = vld [vmem:[#allocation11 + $0x108] sm:$0xff] }
  0xcf   :  { %v281_v37 = vadd.f32 %v280_v34, %v251_v33  ;;  %v353_v52 = vadd.f32 %v350_v46, %v349_v48  ;;  %v591_v33 = vld [vmem:[#allocation11 + $0x170] sm:$0xff]  ;;  %v488_v46 = vld [vmem:[#allocation11 + $0x58] sm:$0xff] }
  0xd0   :  { %v508_v34 = vld [vmem:[#allocation11 + $0xd0] sm:$0xff]  ;;  %594 = vmatpush.msrb.mxu3 %v591_v33  ;;  %v505_v48 = vld [vmem:[#allocation11 + $0xb8] sm:$0xff] }
  0xd1   :  { %519 = vmatpush.msrb.mxu1 %v508_v34  ;;  %v579_v33 = vld [vmem:[#allocation11 + $0x110] sm:$0xff]  ;;  %v478_v34 = vld [vmem:[#allocation11 + $0x8] sm:$0xff] }
  0xd2   :  { %v330_v38 = vpop.f32.mrf.mxu2  ;;  %595 = vmatpush.msrb.mxu3 %v590_v36  ;;  %v477_v36 = vld [vmem:[#allocation11] sm:$0xff] }
  0xd3   :  { %v1287_v41 = vadd.f32 %v330_v38, %v281_v37  ;;  %v507_v37 = vld [vmem:[#allocation11 + $0xc8] sm:$0xff]  ;;  %v489_v38 = vld [vmem:[#allocation11 + $0x60] sm:$0xff] }
  0xd4   :  { %520 = vmatpush.msrb.mxu1 %v507_v37  ;;  %546 = vmatpush.msrb.mxu2 %v489_v38  ;;  %v577_v38 = vld [vmem:[#allocation11 + $0x100] sm:$0xff] }
  0xd5   :  { %v254_v44 = vpop.f32.mrf.mxu0  ;;  %v351_v50 = vmul.f32 %v1287_v41, %v1287_v41  ;;  %v341_v53 = vadd.f32 %v340_v49, %v1287_v41  ;;  %v487_v49 = vld [vmem:[#allocation11 + $0x50] sm:$0xff] }
  0xd6   :  { %v283_v45 = vpop.f32.mrf.mxu1  ;;  %547 = vmatpush.msrb.mxu2 %v488_v46 }
  0xd7   :  { %v284_v47 = vadd.f32 %v283_v45, %v254_v44  ;;  %v354_v55 = vadd.f32 %v353_v52, %v351_v50  ;;  %v589_v44 = vld [vmem:[#allocation11 + $0x160] sm:$0xff]  ;;  %v587_v50 = vld [vmem:[#allocation11 + $0x150] sm:$0xff]  ;;  %v486_v52 = vld [vmem:[#allocation11 + $0x48] sm:$0xff] }
  0xd8   :  { %v506_v45 = vld [vmem:[#allocation11 + $0xc0] sm:$0xff]  ;;  %596 = vmatpush.msrb.mxu3 %v589_v44  ;;  %548 = vmatpush.msrb.mxu2 %v487_v49 }
  0xd9   :  { %521 = vmatpush.msrb.mxu1 %v506_v45 }
  0xda   :  { %v333_v51 = vpop.f32.mrf.mxu2  ;;  %549 = vmatpush.msrb.mxu2 %v486_v52 }
  0xdb   :  { %v1301_v54 = vadd.f32 %v333_v51, %v284_v47  ;;  %v588_v47 = vld [vmem:[#allocation11 + $0x158] sm:$0xff]  ;;  %522 = vmatpush.msrb.mxu1 %v505_v48  ;;  %v504_v51 = vld [vmem:[#allocation11 + $0xb0] sm:$0xff] }
  0xdc   :  { %597 = vmatpush.msrb.mxu3 %v588_v47 }
  0xdd   :  { %v342_v56 = vadd.f32 %v341_v53, %v1301_v54  ;;  %v352_v57 = vmul.f32 %v1301_v54, %v1301_v54  ;;  %v586_v53 = vld [vmem:[#allocation11 + $0x148] sm:$0xff]  ;;  %523 = vmatpush.msrb.mxu1 %v504_v51 }
  0xde   :  { %598 = vmatpush.msrb.mxu3 %v587_v50  ;;  %v871_v50 = vld [vmem:[%s1383_s6] ss:$0 sm:$0xff] }
  0xdf   :  { %v343_v58 = vrot.slane %v342_v56, 4  ;;  %v355_v59 = vadd.f32 %v354_v55, %v352_v57  ;;  %v503_v55 = vld [vmem:[#allocation11 + $0xa8] sm:$0xff]  ;;  %v585_v57 = vld [vmem:[#allocation11 + $0x140] sm:$0xff] }
  0xe0   :  { %599 = vmatpush.msrb.mxu3 %v586_v53  ;;  %524 = vmatpush.msrb.mxu1 %v503_v55 }
  0xe1   :  { %v356_v60 = vrot.slane %v355_v59, 4  ;;  %v344_v61 = vadd.f32 %v343_v58, %v342_v56  ;;  %v485_v56 = vld [vmem:[#allocation11 + $0x40] sm:$0xff] }
  0xe2   :  { %v502_v58 = vld [vmem:[#allocation11 + $0xa0] sm:$0xff]  ;;  %550 = vmatpush.msrb.mxu2 %v485_v56  ;;  %600 = vmatpush.msrb.mxu3 %v585_v57 }
  0xe3   :  { %v345_v62 = vrot.slane %v344_v61, 2  ;;  %v357_v63 = vadd.f32 %v356_v60, %v355_v59  ;;  %v484_v60 = vld [vmem:[#allocation11 + $0x38] sm:$0xff]  ;;  %525 = vmatpush.msrb.mxu1 %v502_v58 }
  0xe4   :  { %551 = vmatpush.msrb.mxu2 %v484_v60 }
  0xe5   :  { %v346_v0 = vadd.f32 %v345_v62, %v344_v61  ;;  %v358_v1 = vrot.slane %v357_v63, 2  ;;  %v584_v61 = vld [vmem:[#allocation11 + $0x138] sm:$0xff] }
  0xe6   :  { %v501_v62 = vld [vmem:[#allocation11 + $0x98] sm:$0xff]  ;;  %601 = vmatpush.msrb.mxu3 %v584_v61 }
  0xe7   :  { %v347_v2 = vrot.slane %v346_v0, 1  ;;  %v359_v3 = vadd.f32 %v358_v1, %v357_v63  ;;  %v483_v1 = vld [vmem:[#allocation11 + $0x30] sm:$0xff]  ;;  %526 = vmatpush.msrb.mxu1 %v501_v62 }
  0xe8   :  { %552 = vmatpush.msrb.mxu2 %v483_v1 }
  0xe9   :  { %v348_v4 = vadd.f32 %v347_v2, %v346_v0  ;;  %v360_v5 = vrot.slane %v359_v3, 1  ;;  %v583_v2 = vld [vmem:[#allocation11 + $0x130] sm:$0xff] }
  0xea   :  { %602 = vmatpush.msrb.mxu3 %v583_v2 }
  0xeb   :  { %394 = vmatmul.f32.vlgmr.msra.gmra.mxu3 %v348_v4  ;;  %v361_v6 = vadd.f32 %v360_v5, %v359_v3  ;;  %v500_v3 = vld [vmem:[#allocation11 + $0x90] sm:$0xff]  ;;  %v482_v5 = vld [vmem:[#allocation11 + $0x28] sm:$0xff] }
  0xec   :  { %527 = vmatpush.msrb.mxu1 %v500_v3  ;;  %553 = vmatpush.msrb.mxu2 %v482_v5 }
  0xed   :  { %414 = vmatmul.f32.vlgmr.msrb.gmra.mxu0 %v361_v6  ;;  %v582_v6 = vld [vmem:[#allocation11 + $0x128] sm:$0xff] }
  0xee   :  { %603 = vmatpush.msrb.mxu3 %v582_v6  ;;  %528 = vmatpush.msrb.mxu1 %v499_v7  ;;  %v774_v6 = vld [vmem:[#allocation12 + $0x78] sm:$0xff]  ;;  %v773_v7 = vld [vmem:[#allocation12 + $0x70] sm:$0xff] }
  0xef   :  { %554 = vmatpush.msrb.mxu2 %v481_v18  ;;  %v772_v18 = vld [vmem:[#allocation12 + $0x68] sm:$0xff] }
  0xf0   :  { %604 = vmatpush.msrb.mxu3 %v581_v19  ;;  %529 = vmatpush.msrb.mxu1 %v498_v24  ;;  %v771_v19 = vld [vmem:[#allocation12 + $0x60] sm:$0xff]  ;;  %v770_v24 = vld [vmem:[#allocation12 + $0x58] sm:$0xff] }
  0xf1   :  { %555 = vmatpush.msrb.mxu2 %v480_v26 }
  0xf2   :  { %684 = vmatpush.msra.mxu1 %v1214_v9  ;;  %605 = vmatpush.msrb.mxu3 %v580_v27 }
  0xf3   :  { %556 = vmatpush.msrb.mxu2 %v479_v32  ;;  %v769_v32 = vld [vmem:[#allocation12 + $0x50] sm:$0xff] }
  0xf4   :  { %685 = vmatpush.msra.mxu1 %v1218_v10  ;;  %606 = vmatpush.msrb.mxu3 %v579_v33  ;;  %v768_v33 = vld [vmem:[#allocation12 + $0x48] sm:$0xff] }
  0xf5   :  { %557 = vmatpush.msrb.mxu2 %v478_v34  ;;  %v767_v34 = vld [vmem:[#allocation12 + $0x40] sm:$0xff] }
  0xf6   :  { %686 = vmatpush.msra.mxu1 %v1222_v11  ;;  %607 = vmatpush.msrb.mxu3 %v578_v35 }
  0xf7   :  { %558 = vmatpush.msrb.mxu2 %v477_v36 }
  0xf8   :  { %687 = vmatpush.msra.mxu1 %v1226_v12  ;;  %608 = vmatpush.msrb.mxu3 %v577_v38 }
  0xf9   :  { %779 = vmatpush.msra.mxu2 %v774_v6 }
  0xfa   :  { %688 = vmatpush.msra.mxu1 %v1230_v13  ;;  %838 = vmatpush.msra.mxu3 %v774_v6 }
  0xfb   :  { %780 = vmatpush.msra.mxu2 %v773_v7 }
  0xfc   :  { %689 = vmatpush.msra.mxu1 %v1234_v14  ;;  %839 = vmatpush.msra.mxu3 %v773_v7 }
  0xfd   :  { %781 = vmatpush.msra.mxu2 %v772_v18 }
  0xfe   :  { %690 = vmatpush.msra.mxu1 %v1238_v15  ;;  %840 = vmatpush.msra.mxu3 %v772_v18 }
  0xff   :  { %782 = vmatpush.msra.mxu2 %v771_v19 }
 0x100   :  { %691 = vmatpush.msra.mxu1 %v1242_v16  ;;  %841 = vmatpush.msra.mxu3 %v771_v19 }
 0x101   :  { %783 = vmatpush.msra.mxu2 %v770_v24 }
 0x102   :  { %692 = vmatpush.msra.mxu1 %v1246_v17  ;;  %842 = vmatpush.msra.mxu3 %v770_v24 }
 0x103   :  { %784 = vmatpush.msra.mxu2 %v769_v32 }
 0x104   :  { %693 = vmatpush.msra.mxu1 %v1250_v20  ;;  %843 = vmatpush.msra.mxu3 %v769_v32 }
 0x105   :  { %785 = vmatpush.msra.mxu2 %v768_v33 }
 0x106   :  { %694 = vmatpush.msra.mxu1 %v1254_v21  ;;  %844 = vmatpush.msra.mxu3 %v768_v33 }
 0x107   :  { %786 = vmatpush.msra.mxu2 %v767_v34 }
 0x108   :  { %695 = vmatpush.msra.mxu1 %v1258_v22  ;;  %845 = vmatpush.msra.mxu3 %v767_v34 }
 0x10a   :  { %696 = vmatpush.msra.mxu1 %v1260_v23 }
 0x10c   :  { %697 = vmatpush.msra.mxu1 %v1264_v25 }
 0x10e   :  { %698 = vmatpush.msra.mxu1 %v1268_v28 }
 0x110   :  { %699 = vmatpush.msra.mxu1 %v1272_v31 }
 0x16a   :  { %v415_v0 = vpop.f32.mrf.mxu0 }
 0x16e   :  { %v395_v59 = vpop.f32.mrf.mxu3 }
 0x16f   :  { %v418_v63 = vmul.f32 %v395_v59, %v395_v59  ;;  %v420_v10 = vperm.slane %v395_v59, 0 }
 0x171   :  { %v419_v4 = vsub.f32 %v415_v0, %v418_v63  ;;  %v421_v11 = vsub.f32 %v1285_v40, %v420_v10  ;;  %v422_v48 = vsub.f32 %v1282_v39, %v420_v10  ;;  %v423_v13 = vsub.f32 %v1287_v41, %v420_v10  ;;  %v872_v40 = vld [vmem:[%s1384_s7] ss:$0 sm:$0xff] }
 0x172   :  { %v424_v49 = vsub.f32 %v1301_v54, %v420_v10  ;;  %v765_v10 = vld [vmem:[#allocation12 + $0x30] sm:$0xff] }
 0x173   :  { %v425_v8 = vadd.f32 1e-05, %v419_v4 }
 0x175   :  { %876 = vrsqrt.f32 %v425_v8  ;;  %vm432_vm1 = vweird.f32 %v425_v8 }
 0x17b   :  { %v877_v37 = vpop.eup %876 }
 0x17c   :  { %v427_v44 = vmul.f32 %v877_v37, %v425_v8  ;;  %vm433_vm0 = vweird.f32 %v877_v37 }
 0x17d   :  { %vm434_vm2 = vmor %vm432_vm1, %vm433_vm0 }
 0x17e   :  { %v428_v45 = vmul.f32 %v877_v37, %v427_v44 }
 0x180   :  { %v429_v9 = vmul.f32 0.5, %v428_v45 }
 0x182   :  { %v430_v46 = vsub.f32 1.5, %v429_v9 }
 0x184   :  { %v431_v47 = vmul.f32 %v877_v37, %v430_v46 }
 0x186   :  { %v435_v12 = vsel %vm434_vm2, %v877_v37, %v431_v47  ;;  %v766_v37 = vld [vmem:[#allocation12 + $0x38] sm:$0xff]  ;;  %v764_v47 = vld [vmem:[#allocation12 + $0x28] sm:$0xff] }
 0x187   :  { %v436_v14 = vperm.slane %v435_v12, 0  ;;  %787 = vmatpush.msra.mxu2 %v766_v37  ;;  %846 = vmatpush.msra.mxu3 %v766_v37  ;;  %v874_v37 = vld [vmem:[%s1386_s9] ss:$0 sm:$0xff] }
 0x189   :  { %v437_v15 = vmul.f32 %v436_v14, %v421_v11  ;;  %v438_v51 = vmul.f32 %v436_v14, %v422_v48  ;;  %v439_v52 = vmul.f32 %v436_v14, %v423_v13  ;;  %v440_v16 = vmul.f32 %v436_v14, %v424_v49  ;;  %788 = vmatpush.msra.mxu2 %v765_v10  ;;  %v763_v48 = vld [vmem:[#allocation12 + $0x20] sm:$0xff]  ;;  %v762_v49 = vld [vmem:[#allocation12 + $0x18] sm:$0xff] }
 0x18a   :  { %847 = vmatpush.msra.mxu3 %v765_v10 }
 0x18b   :  { %v445_v39 = vmul.f32 %v871_v50, %v437_v15  ;;  %v446_v41 = vmul.f32 %v871_v50, %v438_v51  ;;  %v447_v54 = vmul.f32 %v871_v50, %v439_v52  ;;  %v448_v53 = vmul.f32 %v871_v50, %v440_v16  ;;  %789 = vmatpush.msra.mxu2 %v764_v47 }
 0x18c   :  { %848 = vmatpush.msra.mxu3 %v764_v47 }
 0x18d   :  { %v453_v55 = vadd.f32 %v872_v40, %v445_v39  ;;  %v454_v56 = vadd.f32 %v872_v40, %v446_v41  ;;  %v455_v57 = vadd.f32 %v872_v40, %v447_v54  ;;  %v456_v17 = vadd.f32 %v872_v40, %v448_v53  ;;  %790 = vmatpush.msra.mxu2 %v763_v48  ;;  %v761_v40 = vld [vmem:[#allocation12 + $0x10] sm:$0xff] }
 0x18e   :  { %849 = vmatpush.msra.mxu3 %v763_v48 }
 0x18f   :  { %vm457_vm3 = vcmp.gt.f32.partialorder %v453_v55, 0.0  ;;  %vm458_vm4 = vcmp.gt.f32.partialorder %v454_v56, 0.0  ;;  %vm459_vm5 = vcmp.gt.f32.partialorder %v455_v57, 0.0  ;;  %vm460_vm6 = vcmp.gt.f32.partialorder %v456_v17, 0.0  ;;  %791 = vmatpush.msra.mxu2 %v762_v49 }
 0x190   :  { %v461_v58 = vmul.f32 0.01, %v453_v55  ;;  %v462_v20 = vmul.f32 0.01, %v454_v56  ;;  %v463_v59 = vmul.f32 0.01, %v455_v57  ;;  %850 = vmatpush.msra.mxu3 %v762_v49 }
 0x191   :  { %v464_v60 = vmul.f32 0.01, %v456_v17  ;;  %792 = vmatpush.msra.mxu2 %v761_v40 }
 0x192   :  { %v465_v61 = vsel %vm457_vm3, %v453_v55, %v461_v58  ;;  %v466_v21 = vsel %vm458_vm4, %v454_v56, %v462_v20  ;;  %v467_v62 = vsel %vm459_vm5, %v455_v57, %v463_v59  ;;  %v760_v55 = vld [vmem:[#allocation12 + $0x8] sm:$0xff]  ;;  %851 = vmatpush.msra.mxu3 %v761_v40  ;;  %v759_v58 = vld [vmem:[#allocation12] sm:$0xff] }
 0x193   :  { %v468_v63 = vsel %vm460_vm6, %v456_v17, %v464_v60  ;;  %469 = vst [vmem:[#allocation2 + $0x1] sm:$0xff] %v465_v61  ;;  %530 = vmatmul.f32.vlgmr.msrb.gmra.mxu1 %v465_v61  ;;  %793 = vmatpush.msra.mxu2 %v760_v55 }
 0x194   :  { %470 = vst [vmem:[#allocation2 + $0x9] sm:$0xff] %v466_v21  ;;  %852 = vmatpush.msra.mxu3 %v760_v55 }
 0x195   :  { %471 = vst [vmem:[#allocation2 + $0x19] sm:$0xff] %v467_v62  ;;  %794 = vmatpush.msra.mxu2 %v759_v58 }
 0x196   :  { %472 = vst [vmem:[#allocation2 + $0x21] sm:$0xff] %v468_v63  ;;  %853 = vmatpush.msra.mxu3 %v759_v58 }
 0x19a   :  { %v473_v22 = vld [vmem:[#allocation2] sm:$0xff] }
 0x19b   :  { %559 = vmatmul.f32.vlgmr.msrb.gmra.mxu2 %v473_v22  ;;  %v572_v23 = vld [vmem:[#allocation2 + $0x2] sm:$0xff]  ;;  %533 = vmatmul.f32.gmra.mxu1 %v466_v21  ;;  %v573_v25 = vld [vmem:[#allocation2 + $0xa] sm:$0xff] }
 0x19c   :  { %609 = vmatmul.f32.vlgmr.msrb.gmra.mxu3 %v572_v23  ;;  %v474_v0 = vld [vmem:[#allocation2 + $0x8] sm:$0xff]  ;;  %v475_v1 = vld [vmem:[#allocation2 + $0x18] sm:$0xff] }
 0x19d   :  { %v574_v2 = vld [vmem:[#allocation2 + $0x1a] sm:$0xff]  ;;  %v575_v3 = vld [vmem:[#allocation2 + $0x22] sm:$0xff] }
 0x19e   :  { %v476_v28 = vld [vmem:[#allocation2 + $0x20] sm:$0xff] }
 0x1a3   :  { %562 = vmatmul.f32.gmra.mxu2 %v474_v0  ;;  %536 = vmatmul.f32.gmra.mxu1 %v467_v62 }
 0x1a4   :  { %612 = vmatmul.f32.gmra.mxu3 %v573_v25 }
 0x1ab   :  { %565 = vmatmul.f32.gmra.mxu2 %v475_v1  ;;  %539 = vmatmul.f32.gmra.mxu1 %v468_v63 }
 0x1ac   :  { %615 = vmatmul.f32.gmra.mxu3 %v574_v2 }
 0x1b3   :  { %568 = vmatmul.f32.gmra.mxu2 %v476_v28 }
 0x1b4   :  { %618 = vmatmul.f32.gmra.mxu3 %v575_v3 }
 0x1bb   :  { %795 = vmatmul.f32.vlgmr.msra.gmra.mxu2 %v1202_v29 }
 0x1bc   :  { %801 = vmatmul.f32.vlgmr.msra.gmra.mxu3 %v1208_v42 }
 0x1c3   :  { %798 = vmatmul.f32.gmra.mxu2 %v1204_v30 }
 0x1c4   :  { %804 = vmatmul.f32.gmra.mxu3 %v1210_v43 }
 0x210   :  { %v531_v31 = vpop.f32.mrf.mxu1 }
 0x218   :  { %v534_v8 = vpop.f32.mrf.mxu1 }
 0x21e   :  { %v560_v4 = vpop.f32.mrf.mxu2 }
 0x21f   :  { %v610_v5 = vpop.f32.mrf.mxu3  ;;  %v561_v44 = vadd.f32 %v560_v4, %v531_v31 }
 0x220   :  { %v537_v35 = vpop.f32.mrf.mxu1 }
 0x221   :  { %v1342_v11 = vadd.f32 %v610_v5, %v561_v44 }
 0x223   :  { %v635_v15 = vmul.f32 %v1342_v11, %v1342_v11 }
 0x226   :  { %v563_v26 = vpop.f32.mrf.mxu2 }
 0x227   :  { %v613_v27 = vpop.f32.mrf.mxu3  ;;  %v564_v36 = vadd.f32 %v563_v26, %v534_v8 }
 0x228   :  { %v540_v14 = vpop.f32.mrf.mxu1 }
 0x229   :  { %v1340_v46 = vadd.f32 %v613_v27, %v564_v36 }
 0x22b   :  { %v636_v13 = vmul.f32 %v1340_v46, %v1340_v46  ;;  %v626_v51 = vadd.f32 %v1340_v46, %v1342_v11 }
 0x22d   :  { %v639_v41 = vadd.f32 %v636_v13, %v635_v15 }
 0x22e   :  { %v566_v38 = vpop.f32.mrf.mxu2 }
 0x22f   :  { %v567_v45 = vadd.f32 %v566_v38, %v537_v35  ;;  %v616_v9 = vpop.f32.mrf.mxu3  ;;  %v873_v35 = vld [vmem:[%s1385_s8] ss:$0 sm:$0xff]  ;;  %s1094_s8 = smov [#allocation15]  }
 0x230   :  { %s820_s9 = sshll.u32 %s1094_s8, 4  ;;  %s821_s9 = int_to_ptr.vmem [resolvable:$true] %s820_s9 }
 0x231   :  { %v1344_v12 = vadd.f32 %v616_v9, %v567_v45  ;;  %v875_v9 = vld [vmem:[%s1387_s10] ss:$0 sm:$0xff] }
 0x233   :  { %v637_v52 = vmul.f32 %v1344_v12, %v1344_v12  ;;  %v627_v54 = vadd.f32 %v626_v51, %v1344_v12 }
 0x235   :  { %v640_v56 = vadd.f32 %v639_v41, %v637_v52 }
 0x236   :  { %v569_v50 = vpop.f32.mrf.mxu2 }
 0x237   :  { %v570_v16 = vadd.f32 %v569_v50, %v540_v14  ;;  %v619_v39 = vpop.f32.mrf.mxu3 }
 0x239   :  { %v625_v53 = vadd.f32 %v619_v39, %v570_v16 }
 0x23b   :  { %v628_v57 = vadd.f32 %v627_v54, %v625_v53  ;;  %v638_v17 = vmul.f32 %v625_v53, %v625_v53 }
 0x23d   :  { %v629_v20 = vrot.slane %v628_v57, 4  ;;  %v641_v59 = vadd.f32 %v640_v56, %v638_v17 }
 0x23e   :  { %v796_v8 = vpop.f32.mrf.mxu2 }
 0x23f   :  { %v630_v60 = vadd.f32 %v629_v20, %v628_v57  ;;  %v642_v61 = vrot.slane %v641_v59, 4  ;;  %v802_v18 = vpop.f32.mrf.mxu3  ;;  %v797_v15 = vadd.f32 %v875_v9, %v796_v8 }
 0x240   :  { %v803_v51 = vadd.f32 %v875_v9, %v802_v18 }
 0x241   :  { %v631_v21 = vrot.slane %v630_v60, 2  ;;  %v643_v62 = vadd.f32 %v642_v61, %v641_v59 }
 0x243   :  { %v632_v63 = vadd.f32 %v631_v21, %v630_v60  ;;  %v644_v22 = vrot.slane %v643_v62, 2 }
 0x245   :  { %v633_v23 = vrot.slane %v632_v63, 1  ;;  %v645_v0 = vadd.f32 %v644_v22, %v643_v62 }
 0x247   :  { %v634_v25 = vadd.f32 %v633_v23, %v632_v63  ;;  %v646_v1 = vrot.slane %v645_v0, 1  ;;  %v805_v48 = vpop.f32.mrf.mxu3 }
 0x248   :  { %v806_v16 = vadd.f32 %v875_v9, %v805_v48 }
 0x249   :  { %680 = vmatmul.f32.vlgmr.msra.gmra.mxu0 %v634_v25  ;;  %v647_v2 = vadd.f32 %v646_v1, %v645_v0 }
 0x24b   :  { %700 = vmatmul.f32.vlgmr.msra.gmra.mxu1 %v647_v2 }
 0x2c6   :  { %v681_v28 = vpop.f32.mrf.mxu0 }
 0x2c7   :  { %v704_v3 = vmul.f32 %v681_v28, %v681_v28  ;;  %v706_v19 = vperm.slane %v681_v28, 0 }
 0x2c8   :  { %v701_v29 = vpop.f32.mrf.mxu1 }
 0x2c9   :  { %v705_v31 = vsub.f32 %v701_v29, %v704_v3  ;;  %v707_v43 = vsub.f32 %v1342_v11, %v706_v19  ;;  %v708_v27 = vsub.f32 %v1340_v46, %v706_v19  ;;  %v709_v32 = vsub.f32 %v1344_v12, %v706_v19  ;;  %v799_v11 = vpop.f32.mrf.mxu2 }
 0x2ca   :  { %v710_v33 = vsub.f32 %v625_v53, %v706_v19  ;;  %v800_v52 = vadd.f32 %v875_v9, %v799_v11 }
 0x2cb   :  { %v711_v42 = vadd.f32 1e-05, %v705_v31 }
 0x2cd   :  { %878 = vrsqrt.f32 %v711_v42  ;;  %vm718_vm8 = vweird.f32 %v711_v42 }
 0x2d3   :  { %v879_v4 = vpop.eup %878 }
 0x2d4   :  { %v713_v5 = vmul.f32 %v879_v4, %v711_v42  ;;  %vm719_vm7 = vweird.f32 %v879_v4 }
 0x2d5   :  { %vm720_vm9 = vmor %vm718_vm8, %vm719_vm7 }
 0x2d6   :  { %v714_v6 = vmul.f32 %v879_v4, %v713_v5 }
 0x2d8   :  { %v715_v7 = vmul.f32 0.5, %v714_v6 }
 0x2da   :  { %v716_v24 = vsub.f32 1.5, %v715_v7 }
 0x2dc   :  { %v717_v30 = vmul.f32 %v879_v4, %v716_v24 }
 0x2de   :  { %v721_v26 = vsel %vm720_vm9, %v879_v4, %v717_v30 }
 0x2df   :  { %v722_v34 = vperm.slane %v721_v26, 0 }
 0x2e1   :  { %v723_v36 = vmul.f32 %v722_v34, %v707_v43  ;;  %v725_v38 = vmul.f32 %v722_v34, %v709_v32  ;;  %v724_v44 = vmul.f32 %v722_v34, %v708_v27  ;;  %v726_v45 = vmul.f32 %v722_v34, %v710_v33 }
 0x2e3   :  { %v731_v10 = vmul.f32 %v873_v35, %v723_v36  ;;  %v733_v46 = vmul.f32 %v873_v35, %v725_v38  ;;  %v732_v47 = vmul.f32 %v873_v35, %v724_v44  ;;  %v734_v12 = vmul.f32 %v873_v35, %v726_v45 }
 0x2e5   :  { %v739_v13 = vadd.f32 %v874_v37, %v731_v10  ;;  %v741_v49 = vadd.f32 %v874_v37, %v733_v46  ;;  %v740_v14 = vadd.f32 %v874_v37, %v732_v47  ;;  %v742_v50 = vadd.f32 %v874_v37, %v734_v12 }
 0x2e7   :  { %vm743_vm10 = vcmp.gt.f32.partialorder %v739_v13, 0.0  ;;  %v747_v40 = vmul.f32 0.01, %v739_v13  ;;  %vm745_vm11 = vcmp.gt.f32.partialorder %v741_v49, 0.0  ;;  %v749_v39 = vmul.f32 0.01, %v741_v49 }
 0x2e8   :  { %vm744_vm12 = vcmp.gt.f32.partialorder %v740_v14, 0.0  ;;  %v748_v41 = vmul.f32 0.01, %v740_v14  ;;  %vm746_vm13 = vcmp.gt.f32.partialorder %v742_v50, 0.0  ;;  %v750_v54 = vmul.f32 0.01, %v742_v50 }
 0x2e9   :  { %v751_v53 = vsel %vm743_vm10, %v739_v13, %v747_v40  ;;  %v753_v55 = vsel %vm745_vm11, %v741_v49, %v749_v39 }
 0x2ea   :  { %v808_v56 = vadd.f32 %v797_v15, %v751_v53  ;;  %v810_v57 = vadd.f32 %v803_v51, %v753_v55  ;;  %v752_v17 = vsel %vm744_vm12, %v740_v14, %v748_v41  ;;  %v754_v58 = vsel %vm746_vm13, %v742_v50, %v750_v54 }
 0x2eb   :  { %v809_v20 = vadd.f32 %v800_v52, %v752_v17  ;;  %v811_v59 = vadd.f32 %v806_v16, %v754_v58 }
 0x2ec   :  { %812 = vst [vmem:[#allocation15] sm:$0xff] %v808_v56 }
 0x2ed   :  { %814 = vst [vmem:[#allocation15 + $0x10] sm:$0xff] %v810_v57 }
 0x2ee   :  { %813 = vst [vmem:[#allocation15 + $0x8] sm:$0xff] %v809_v20 }
 0x2ef   :  { %815 = vst [vmem:[#allocation15 + $0x18] sm:$0xff] %v811_v59 }
 0x2f0   :  { %828 = dma.vmem_to_hbm [thread:$0]  %s821_s9, 512, %s823_s25, [#allocation5], %s1086_s17, %s1086_s17, %s1087_s18  }
 0x2f1   :  { %1080 = dma.done.wait [#allocation5], 512  }
 0x2f2   :  { %1081 = vsyncadd [#allocation5], 4294966784 }
 0x2f3   :  { %833 = vsyncpa [#allocation4], 1 }
 0x2f4   :  { %834 = vsyncpa [#allocation7], 1 }
 0x2f5   :  { %835 = vsyncpa [#allocation10], 1 }
 0x2f6   :  { %836 = vsyncpa [#allocation13], 1 }
 0x2f7   :  { %837 = vsyncpa [#allocation5], 1 }

</bundles_post_ra>
